<compile_context>
chip_gen: v7x
topology: tpu7x:2x2x1
jax: 0.10.0
libtpu: 0.0.40
codegen_flags: <defaults>
</compile_context>

<pallas_src>
import math

import jax
import jax.numpy as jnp
from jax.experimental import pallas as pl
from jax.experimental.pallas import tpu as pltpu


# ----------------------------------------------------------------------------
# Fused kernel: banded conv3x3 (3 accumulated matmuls) + bias + ReLU + shuffle
# ----------------------------------------------------------------------------
def decoder_block_kernel(x_ref, wb_ref, b_ref, o_ref):
    # x_ref  : (bb, H+2, (W+2)*Cin)  bf16  -- spatially pre-padded, lane-dense rows
    # wb_ref : (3, (W+2)*Cin, N)     bf16  -- banded weights, N = 4*W*C, cols (i,w,j,c)
    # b_ref  : (1, N)                f32
    # o_ref  : (bb, H, N)            f32   -- lane = (i, w, j, c) == pixel-shuffled rows
    bb, hp, k = x_ref.shape
    h = hp - 2
    n = wb_ref.shape[-1]

    x = x_ref[...]                                   # single VMEM load

    # Banded conv: y[b, h] = sum_dy x[b, h+dy] @ W_band[dy]   (f32 accumulation)
    y = jnp.zeros((bb * h, n), jnp.float32)
    for dy in range(3):                              # static unroll, 3 big MXU matmuls
        rows = x[:, dy:dy + h, :].reshape(bb * h, k)
        y = y + jnp.dot(rows, wb_ref[dy], preferred_element_type=jnp.float32)

    y = jnp.maximum(y + b_ref[...], 0.0)             # bias + ReLU (f32)

    # Columns are already in pixel-shuffle order -> one lane-dense store.
    o_ref[...] = y.reshape(bb, h, n)                 # major-dim split only


# ----------------------------------------------------------------------------
# Batch-block picker: largest divisor of B that fits the VMEM budget.
# (No forced multi-step grid: on single-TC v5e/v6e extra steps are pure overhead.)
# ----------------------------------------------------------------------------
def _round_up(v, m):
    return ((v + m - 1) // m) * m


def _pick_batch_block(batch, h, w, cin, c, vmem_budget):
    k_pad = _round_up((w + 2) * cin, 128)
    n_pad = _round_up(4 * w * c, 128)

    def footprint(bb):
        x_blk = bb * _round_up(h + 2, 16) * k_pad * 2      # bf16 input block
        o_blk = bb * _round_up(h, 8) * n_pad * 4           # f32 output block
        acc = bb * _round_up(h, 8) * n_pad * 4             # f32 accumulator
        wts = 3 * k_pad * n_pad * 2 + n_pad * 4            # bands + bias
        return 2 * (x_blk + o_blk) + acc + wts             # x/o double-buffered

    bb = 1
    for cand in range(1, batch + 1):
        if batch % cand == 0 and footprint(cand) <= vmem_budget:
            bb = cand
    return bb


# ----------------------------------------------------------------------------
# Wrapper: layout plumbing (NCHW<->lane-dense, padding, banded-weight build)
# ----------------------------------------------------------------------------
def simple_decoder_block(x_nchw, conv_w, conv_b, *, batch_block=None,
                         vmem_limit_bytes=48 * 1024 * 1024):
    """Forward pass of SimpleDecoderBlock.

    x_nchw : (B, Cin, H, W) float32
    conv_w : (Cout, Cin, 3, 3) float32 (torch Conv2d layout)
    conv_b : (Cout,) float32
    returns (B, Cout//4, 2H, 2W) float32
    """
    B, cin, H, W = x_nchw.shape
    cout = conv_w.shape[0]
    assert conv_w.shape == (cout, cin, 3, 3)
    assert cout % 4 == 0, "PixelShuffle(2) requires planes % 4 == 0"
    c = cout // 4
    n_cols = 4 * W * c                                   # = W * Cout, lane-dense output width

    # --- banded (block-Toeplitz) weights, columns ordered (i, w, j, c) ------------
    # w_t[dy, dx, ci, i, j, c] = conv_w[c*4 + 2i + j, ci, dy, dx]
    w_t = jnp.transpose(conv_w, (2, 3, 1, 0)).reshape(3, 3, cin, c, 2, 2)
    w_t = jnp.transpose(w_t, (0, 1, 2, 4, 5, 3))         # (dy, dx, ci, i, j, c)
    # Toeplitz selector: sel[w', dx, w] = 1 iff w' == w + dx
    sel = (jnp.arange(W + 2)[:, None, None]
           == (jnp.arange(W)[None, None, :] + jnp.arange(3)[None, :, None])
           ).astype(jnp.float32)
    # W_band[dy, (w', ci), (i, w, j, c)]
    wb = jnp.einsum('pdw,ydxijq->ypxiwjq', sel, w_t)     # (3, W+2, cin, 2, W, 2, c)
    wb = wb.reshape(3, (W + 2) * cin, n_cols).astype(jnp.bfloat16)

    # Bias, broadcast over w, same (i, w, j, c) column order.
    b_t = jnp.transpose(conv_b.reshape(c, 2, 2), (1, 2, 0))          # (i, j, c)
    bias_row = jnp.broadcast_to(b_t[:, None, :, :], (2, W, 2, c))
    bias_row = bias_row.reshape(1, n_cols).astype(jnp.float32)

    # --- input: NCHW -> lane-dense padded rows (B, H+2, (W+2)*Cin), bf16 ----------
    x = jnp.transpose(x_nchw, (0, 2, 3, 1))                           # (B, H, W, Cin)
    x = jnp.pad(x, ((0, 0), (1, 1), (1, 1), (0, 0)))                  # conv padding = 1
    x = x.reshape(B, H + 2, (W + 2) * cin).astype(jnp.bfloat16)

    if batch_block is None:
        bb = _pick_batch_block(B, H, W, cin, c, vmem_budget=40 * 1024 * 1024)
    else:
        bb = batch_block
    assert B % bb == 0, (B, bb)
    grid = (B // bb,)

    out = pl.pallas_call(
        decoder_block_kernel,
        out_shape=jax.ShapeDtypeStruct((B, H, n_cols), jnp.float32),
        grid=grid,
        in_specs=[
            pl.BlockSpec((bb, H + 2, (W + 2) * cin), lambda i: (i, 0, 0)),
            pl.BlockSpec((3, (W + 2) * cin, n_cols), lambda i: (0, 0, 0)),
            pl.BlockSpec((1, n_cols), lambda i: (0, 0)),
        ],
        out_specs=pl.BlockSpec((bb, H, n_cols), lambda i: (i, 0, 0)),
        compiler_params=pltpu.CompilerParams(
            dimension_semantics=("parallel",),
            vmem_limit_bytes=vmem_limit_bytes),
    )(x, wb, bias_row)

    # (B, H, (i, w, j, c)) has identical memory order to (B, 2H, 2W, C): pure view.
    out = out.reshape(B, 2 * H, 2 * W, c)
    return jnp.transpose(out, (0, 3, 1, 2))              # -> NCHW (torch parity)


# ----------------------------------------------------------------------------
# Pure-JAX reference (conv + relu + pixel shuffle, torch semantics)
# ----------------------------------------------------------------------------
def reference_forward(x_nchw, conv_w, conv_b):
    y = jax.lax.conv_general_dilated(
        x_nchw, conv_w, window_strides=(1, 1), padding=((1, 1), (1, 1)),
        dimension_numbers=("NCHW", "OIHW", "NCHW"))
    y = y + conv_b[None, :, None, None]
    y = jnp.maximum(y, 0.0)
    B, co, H, W = y.shape
    c = co // 4
    y = y.reshape(B, c, 2, 2, H, W)
    y = jnp.transpose(y, (0, 1, 4, 2, 5, 3))
    return y.reshape(B, c, 2 * H, 2 * W)


# ----------------------------------------------------------------------------
# Deterministic init (torch Conv2d-style uniform bounds)
# ----------------------------------------------------------------------------
def init_params(key, inplanes, planes):
    kw, kb = jax.random.split(key)
    fan_in = inplanes * 9
    bound = 1.0 / math.sqrt(fan_in)
    w = jax.random.uniform(kw, (planes, inplanes, 3, 3), jnp.float32, -bound, bound)
    b = jax.random.uniform(kb, (planes,), jnp.float32, -bound, bound)
    return w, b


if __name__ == "__main__":
    key = jax.random.PRNGKey(0)
    kx, kp = jax.random.split(key)

    BATCH, INPLANES, PLANES, H, W = 2, 8, 32, 16, 16
    x = jax.random.normal(kx, (BATCH, INPLANES, H, W), jnp.float32)
    conv_w, conv_b = init_params(kp, INPLANES, PLANES)

    out = jax.block_until_ready(simple_decoder_block(x, conv_w, conv_b))
    assert out.shape == (BATCH, PLANES // 4, 2 * H, 2 * W), out.shape

    # Compare against the reference evaluated on the same bf16-rounded operands
    # (the kernel does exact bf16 products with f32 accumulation).
    x32 = x.astype(jnp.bfloat16).astype(jnp.float32)
    w32 = conv_w.astype(jnp.bfloat16).astype(jnp.float32)
    ref = jax.block_until_ready(reference_forward(x32, w32, conv_b))
    max_err = float(jnp.max(jnp.abs(out - ref)))
    assert max_err < 5e-3, f"mismatch vs reference: {max_err}"

    print("KERNEL_OK")
</pallas_src>

<mosaic_0001>
module attributes {stable_mosaic.version = 11 : i64} {
  func.func @decoder_block_kernel(%arg0: i32, %arg1: memref<2x18x144xbf16, #tpu.memory_space<vmem>>, %arg2: memref<3x144x512xbf16, #tpu.memory_space<vmem>>, %arg3: memref<1x512xf32, #tpu.memory_space<vmem>>, %arg4: memref<2x16x512xf32, #tpu.memory_space<vmem>>) attributes {dimension_semantics = [#tpu.dimension_semantics<parallel>], iteration_bounds = array<i64: 1>, scalar_prefetch = 0 : i64, scratch_operands = 0 : i64, tpu.core_type = #tpu.core_type<tc>, window_params = [{transform_indices = @transform_0, window_bounds = array<i64: 2, 18, 144>}, {pipeline_mode = #tpu.pipeline_mode<synchronous>, transform_indices = @transform_1, window_bounds = array<i64: 3, 144, 512>}, {pipeline_mode = #tpu.pipeline_mode<synchronous>, transform_indices = @transform_2, window_bounds = array<i64: 1, 512>}, {transform_indices = @transform_3, window_bounds = array<i64: 2, 16, 512>}]} {
    %c0 = arith.constant 0 : index
    %c0_0 = arith.constant 0 : index
    %c0_1 = arith.constant 0 : index
    %0 = vector.load %arg1[%c0, %c0_0, %c0_1] : memref<2x18x144xbf16, #tpu.memory_space<vmem>>, vector<2x18x144xbf16>
    %cst = arith.constant 0.000000e+00 : f32
    %1 = vector.broadcast %cst : f32 to vector<32x512xf32>
    %2 = vector.extract_strided_slice %0 {offsets = [0, 0, 0], sizes = [2, 16, 144], strides = [1, 1, 1]} : vector<2x18x144xbf16> to vector<2x16x144xbf16>
    %3 = vector.shape_cast %2 : vector<2x16x144xbf16> to vector<32x144xbf16>
    %c0_2 = arith.constant 0 : index
    %c0_3 = arith.constant 0 : index
    %c0_4 = arith.constant 0 : index
    %4 = vector.load %arg2[%c0_2, %c0_3, %c0_4] : memref<3x144x512xbf16, #tpu.memory_space<vmem>>, vector<1x144x512xbf16>
    %5 = vector.shape_cast %4 : vector<1x144x512xbf16> to vector<144x512xbf16>
    %cst_5 = arith.constant dense<0.000000e+00> : vector<32x512xf32>
    %6 = tpu.matmul %3, %5, %cst_5 {dimension_numbers = #tpu.dot_dimension_numbers<[1], [0], [0], [1], [0, 0, 1, 1], [], []>} : vector<32x144xbf16>, vector<144x512xbf16>, vector<32x512xf32> -> vector<32x512xf32>
    %7 = arith.addf %1, %6 : vector<32x512xf32>
    %8 = vector.extract_strided_slice %0 {offsets = [0, 1, 0], sizes = [2, 16, 144], strides = [1, 1, 1]} : vector<2x18x144xbf16> to vector<2x16x144xbf16>
    %9 = vector.shape_cast %8 : vector<2x16x144xbf16> to vector<32x144xbf16>
    %c1 = arith.constant 1 : index
    %c0_6 = arith.constant 0 : index
    %c0_7 = arith.constant 0 : index
    %10 = vector.load %arg2[%c1, %c0_6, %c0_7] : memref<3x144x512xbf16, #tpu.memory_space<vmem>>, vector<1x144x512xbf16>
    %11 = vector.shape_cast %10 : vector<1x144x512xbf16> to vector<144x512xbf16>
    %cst_8 = arith.constant dense<0.000000e+00> : vector<32x512xf32>
    %12 = tpu.matmul %9, %11, %cst_8 {dimension_numbers = #tpu.dot_dimension_numbers<[1], [0], [0], [1], [0, 0, 1, 1], [], []>} : vector<32x144xbf16>, vector<144x512xbf16>, vector<32x512xf32> -> vector<32x512xf32>
    %13 = arith.addf %7, %12 : vector<32x512xf32>
    %14 = vector.extract_strided_slice %0 {offsets = [0, 2, 0], sizes = [2, 16, 144], strides = [1, 1, 1]} : vector<2x18x144xbf16> to vector<2x16x144xbf16>
    %15 = vector.shape_cast %14 : vector<2x16x144xbf16> to vector<32x144xbf16>
    %c2 = arith.constant 2 : index
    %c0_9 = arith.constant 0 : index
    %c0_10 = arith.constant 0 : index
    %16 = vector.load %arg2[%c2, %c0_9, %c0_10] : memref<3x144x512xbf16, #tpu.memory_space<vmem>>, vector<1x144x512xbf16>
    %17 = vector.shape_cast %16 : vector<1x144x512xbf16> to vector<144x512xbf16>
    %cst_11 = arith.constant dense<0.000000e+00> : vector<32x512xf32>
    %18 = tpu.matmul %15, %17, %cst_11 {dimension_numbers = #tpu.dot_dimension_numbers<[1], [0], [0], [1], [0, 0, 1, 1], [], []>} : vector<32x144xbf16>, vector<144x512xbf16>, vector<32x512xf32> -> vector<32x512xf32>
    %19 = arith.addf %13, %18 : vector<32x512xf32>
    %c0_12 = arith.constant 0 : index
    %c0_13 = arith.constant 0 : index
    %20 = vector.load %arg3[%c0_12, %c0_13] : memref<1x512xf32, #tpu.memory_space<vmem>>, vector<1x512xf32>
    %21 = vector.broadcast %20 : vector<1x512xf32> to vector<32x512xf32>
    %22 = arith.addf %19, %21 : vector<32x512xf32>
    %cst_14 = arith.constant 0.000000e+00 : f32
    %23 = vector.broadcast %cst_14 : f32 to vector<32x512xf32>
    %24 = arith.maximumf %22, %23 : vector<32x512xf32>
    %25 = vector.shape_cast %24 : vector<32x512xf32> to vector<2x16x512xf32>
    %c0_15 = arith.constant 0 : index
    %c0_16 = arith.constant 0 : index
    %c0_17 = arith.constant 0 : index
    %26 = vector.load %arg4[%c0_15, %c0_16, %c0_17] : memref<2x16x512xf32, #tpu.memory_space<vmem>>, vector<2x16x512xf32>
    tpu.vector_store %arg4[%c0_15, %c0_16, %c0_17], %25 {strides = array<i32>} : memref<2x16x512xf32, #tpu.memory_space<vmem>>, vector<2x16x512xf32>,
    return
  }
  func.func @transform_0(%arg0: i32) -> (i32, i32, i32) {
    %c0_i32 = arith.constant 0 : i32
    %c0_i32_0 = arith.constant 0 : i32
    %c0_i32_1 = arith.constant 0 : i32
    return %arg0, %c0_i32, %c0_i32_0 : i32, i32, i32
  }
  func.func @transform_1(%arg0: i32) -> (i32, i32, i32) {
    %c0_i32 = arith.constant 0 : i32
    %c0_i32_0 = arith.constant 0 : i32
    %c0_i32_1 = arith.constant 0 : i32
    %c0_i32_2 = arith.constant 0 : i32
    return %c0_i32, %c0_i32_0, %c0_i32_1 : i32, i32, i32
  }
  func.func @transform_2(%arg0: i32) -> (i32, i32) {
    %c0_i32 = arith.constant 0 : i32
    %c0_i32_0 = arith.constant 0 : i32
    %c0_i32_1 = arith.constant 0 : i32
    return %c0_i32, %c0_i32_0 : i32, i32
  }
  func.func @transform_3(%arg0: i32) -> (i32, i32, i32) {
    %c0_i32 = arith.constant 0 : i32
    %c0_i32_0 = arith.constant 0 : i32
    %c0_i32_1 = arith.constant 0 : i32
    return %arg0, %c0_i32, %c0_i32_0 : i32, i32, i32
  }
}

</mosaic_0001>

<bundles_post_ra>
// kernel: tpu_custom_call.1
= control target key start
LH: loop header
LB: loop body
LE: loop exit
PB: predicated region body
PF: predicated region fallthrough
CT: control target
= control target key end

     0   :  { %8 = vsyncpa [#allocation3], 0  ;;  %s1781_s0 = inlined_call_operand.vmem [shape: bf16[2,18,144], index: 0, kind: input, shape index: {}]   ;;  %s1782_s1 = inlined_call_operand.hbm [shape: bf16[3,144,512], index: 1, kind: input, shape index: {}]   ;;  %s1783_s2 = inlined_call_operand.vmem [shape: f32[1,512], index: 2, kind: input, shape index: {}]   ;;  %s1784_s3 = inlined_call_operand.hbm [shape: f32[2,16,512], index: 3, kind: output, shape index: {}]  }
   0x1   :  { %9 = vsyncpa [#allocation4], 0  ;;  %s1628_s12 = smov [#allocation2]   ;;  %s1580_s16 = scalar_lea.hbm %s1782_s1, 13824 }
   0x2   :  { %s17_s13 = sshll.u32 %s1628_s12, 4  ;;  %p1581_p0 = scmp.ne.s32.totalorder %s1782_s1, %s1580_s16  ;;  %s18_s13 = int_to_ptr.vmem [resolvable:$true] %s17_s13 }
   0x3   :  { %p1584_p1 = scmp.lt.u32.totalorder %s1580_s16, %s1782_s1 }
   0x5   :  { %p1586_p2 = pnand %p1584_p1, %p1581_p0 }
   0x7   :  { %1589 = shalt.err (!%p1586_p2)
}
   0x8   :  { %s1590_s21 = scalar_lea.vmem %s18_s13, 13824  ;;  %p1595_p4 = scmp.lt.s32.totalorder %s18_s13, %s18_s13 }
   0x9   :  { %p1591_p3 = scmp.ne.s32.totalorder %s18_s13, %s1590_s21  ;;  %p1596_p5 = scmp.lt.s32.totalorder %s1590_s21, %s1590_s21 }
   0xb   :  { %p1597_p6 = por %p1596_p5, %p1595_p4 }
   0xd   :  { %p1598_p7 = pnand %p1597_p6, %p1591_p3 }
   0xf   :  { %1601 = shalt.err (!%p1598_p7)
}
  0x10   :  { %s1629_s22 = smov 256   ;;  %s1630_s23 = smov 16  }
  0x11   :  { %23 = dma.hbm_to_vmem [thread:$0]  %s1782_s1, 13824, %s18_s13, [#allocation3], %s1629_s22, %s1629_s22, %s1630_s23  }
  0x12   :  { %1624 = dma.done.wait [#allocation3], 13824  }
  0x13   :  { %1625 = vsyncadd [#allocation3], 4294953472  ;;  %v1414_v0 = vld [vmem:[#allocation2 + $0x124] ss:$16 sps:$4 sm:$0xff]   ;;  %v1416_v1 = vld [vmem:[#allocation2 + $0x12c] ss:$16 sps:$4 sm:$0xff]  }
  0x14   :  { %361 = vmatprep.subr.bf16.mxu0 %v1414_v0  ;;  %v1418_v2 = vld [vmem:[#allocation2 + $0x120] ss:$16 sps:$4 sm:$0xff]   ;;  %v1419_v3 = vld [vmem:[#allocation2 + $0x128] ss:$16 sps:$4 sm:$0xff]   ;;  %414 = vmatprep.subr.bf16.mxu1 %v1416_v1  ;;  %v1420_v4 = vld [vmem:[#allocation2 + $0x144] ss:$16 sps:$4 sm:$0xff]  }
  0x15   :  { %362 = vmatpush1.bf16.msra.mxu0 %v1418_v2  ;;  %415 = vmatpush1.bf16.msra.mxu1 %v1419_v3  ;;  %v1422_v5 = vld [vmem:[#allocation2 + $0x14c] ss:$16 sps:$4 sm:$0xff]   ;;  %v1424_v6 = vld [vmem:[#allocation2 + $0x140] ss:$16 sps:$4 sm:$0xff]   ;;  %v1425_v7 = vld [vmem:[#allocation2 + $0x148] ss:$16 sps:$4 sm:$0xff]  }
  0x16   :  { %363 = vmatprep.subr.bf16.mxu0 %v1420_v4  ;;  %416 = vmatprep.subr.bf16.mxu1 %v1422_v5  ;;  %v1426_v8 = vld [vmem:[#allocation2 + $0x164] ss:$16 sps:$4 sm:$0xff]   ;;  %v1428_v9 = vld [vmem:[#allocation2 + $0x16c] ss:$16 sps:$4 sm:$0xff]   ;;  %v1430_v10 = vld [vmem:[#allocation2 + $0x160] ss:$16 sps:$4 sm:$0xff]  }
  0x17   :  { %v1431_v11 = vld [vmem:[#allocation2 + $0x168] ss:$16 sps:$4 sm:$0xff]   ;;  %v1432_v12 = vld [vmem:[#allocation2 + $0x184] ss:$16 sps:$4 sm:$0xff]   ;;  %v1434_v13 = vld [vmem:[#allocation2 + $0x18c] ss:$16 sps:$4 sm:$0xff]  }
  0x18   :  { %v1436_v14 = vld [vmem:[#allocation2 + $0x180] ss:$16 sps:$4 sm:$0xff]   ;;  %v1437_v15 = vld [vmem:[#allocation2 + $0x188] ss:$16 sps:$4 sm:$0xff]   ;;  %v1438_v16 = vld [vmem:[#allocation2 + $0x1a4] ss:$16 sps:$4 sm:$0xff]  }
  0x19   :  { %364 = vmatpush1.bf16.msra.mxu0 %v1424_v6  ;;  %417 = vmatpush1.bf16.msra.mxu1 %v1425_v7  ;;  %v1440_v17 = vld [vmem:[#allocation2 + $0x1ac] ss:$16 sps:$4 sm:$0xff]   ;;  %v1442_v18 = vld [vmem:[#allocation2 + $0x1a0] ss:$16 sps:$4 sm:$0xff]   ;;  %v1443_v19 = vld [vmem:[#allocation2 + $0x1a8] ss:$16 sps:$4 sm:$0xff]  }
  0x1a   :  { %365 = vmatprep.subr.bf16.mxu0 %v1426_v8  ;;  %418 = vmatprep.subr.bf16.mxu1 %v1428_v9  ;;  %v1444_v20 = vld [vmem:[#allocation2 + $0x1c4] ss:$16 sps:$4 sm:$0xff]   ;;  %v1446_v21 = vld [vmem:[#allocation2 + $0x1cc] ss:$16 sps:$4 sm:$0xff]   ;;  %v1448_v22 = vld [vmem:[#allocation2 + $0x1c0] ss:$16 sps:$4 sm:$0xff]  }
  0x1b   :  { %v1449_v23 = vld [vmem:[#allocation2 + $0x1c8] ss:$16 sps:$4 sm:$0xff]   ;;  %v1450_v24 = vld [vmem:[#allocation2 + $0x1e4] ss:$16 sps:$4 sm:$0xff]   ;;  %v1452_v25 = vld [vmem:[#allocation2 + $0x1ec] ss:$16 sps:$4 sm:$0xff]  }
  0x1c   :  { %v1454_v26 = vld [vmem:[#allocation2 + $0x1e0] ss:$16 sps:$4 sm:$0xff]   ;;  %v1455_v27 = vld [vmem:[#allocation2 + $0x1e8] ss:$16 sps:$4 sm:$0xff]   ;;  %v1456_v28 = vld [vmem:[#allocation2 + $0x204] ss:$16 sps:$4 sm:$0xff]  }
  0x1d   :  { %366 = vmatpush1.bf16.msra.mxu0 %v1430_v10  ;;  %419 = vmatpush1.bf16.msra.mxu1 %v1431_v11  ;;  %v1458_v29 = vld [vmem:[#allocation2 + $0x20c] ss:$16 sps:$4 sm:$0xff]   ;;  %v1669_v30 = vld [vmem:[%s1781_s0] sm:$0xff]  ;;  %v1679_v32 = vld [vmem:[%s1781_s0 + $0x10] sm:$0x11]  ;;  %vm354_vm3 = vcmask 130048  }
  0x1e   :  { %367 = vmatprep.subr.bf16.mxu0 %v1432_v12  ;;  %420 = vmatprep.subr.bf16.mxu1 %v1434_v13  ;;  %v1674_v31 = vld [vmem:[%s1781_s0 + $0x8] sm:$0xff]  ;;  %v76_v33 = vshrl.u32 %v1669_v30, 16  ;;  %v79_v34 = vshll.u32 %v1669_v30, 16  ;;  %vm72_vm0 = vsmask.f32 3328  ;;  %v95_v37 = vshll.u32 %v1679_v32, 16 }
  0x1f   :  { %v85_v35 = vshll.u32 %v1674_v31, 16  ;;  %v89_v36 = vshrl.u32 %v1674_v31, 16  ;;  %vm73_vm1 = vsmask.f32 7440  ;;  %v1460_v42 = vld [vmem:[#allocation2 + $0x200] ss:$16 sps:$4 sm:$0xff]  }
  0x20   :  { %v78_v38 = vrot.slane %v76_v33, 4  ;;  %v81_v39 = vrot.slane %v79_v34, 5  ;;  %v1461_v43 = vld [vmem:[#allocation2 + $0x208] ss:$16 sps:$4 sm:$0xff]   ;;  %v1462_v44 = vld [vmem:[#allocation2 + $0x224] ss:$16 sps:$4 sm:$0xff]   ;;  %vm1688_vm2 = vmor %vm72_vm0, %vm73_vm1 }
  0x21   :  { %368 = vmatpush1.bf16.msra.mxu0 %v1436_v14  ;;  %421 = vmatpush1.bf16.msra.mxu1 %v1437_v15  ;;  %v87_v40 = vrot.slane %v85_v35, 5  ;;  %v91_v41 = vrot.slane %v89_v36, 4  ;;  %v1464_v45 = vld [vmem:[#allocation2 + $0x22c] ss:$16 sps:$4 sm:$0xff]   ;;  %v97_v48 = vrot.slane %v95_v37, 5  ;;  %v1706_v9 = vld [vmem:[%s1781_s0 + $0x20] sm:$0xff] }
  0x22   :  { %369 = vmatprep.subr.bf16.mxu0 %v1438_v16  ;;  %422 = vmatprep.subr.bf16.mxu1 %v1440_v17  ;;  %v82_v46 = vor.u32 %v81_v39, %v78_v38  ;;  %v1466_v52 = vld [vmem:[#allocation2 + $0x220] ss:$16 sps:$4 sm:$0xff]   ;;  %v1467_v53 = vld [vmem:[#allocation2 + $0x228] ss:$16 sps:$4 sm:$0xff]   ;;  %v1470_v56 = vld [vmem:[#allocation2 + $0x4] ss:$16 sps:$4 sm:$0xff]  }
  0x23   :  { %v92_v47 = vor.u32 %v91_v41, %v87_v40  ;;  %v1473_v58 = vld [vmem:[#allocation2 + $0xc] ss:$16 sps:$4 sm:$0xff]   ;;  %v1468_v60 = vld [vmem:[#allocation2] ss:$16 sps:$4 sm:$0xff]   ;;  %v1471_v61 = vld [vmem:[#allocation2 + $0x8] ss:$16 sps:$4 sm:$0xff]  }
  0x24   :  { %v83_v50 = vrot.slane %v82_v46, 4  ;;  %v1476_v62 = vld [vmem:[#allocation2 + $0x24] ss:$16 sps:$4 sm:$0xff]   ;;  %v1479_v63 = vld [vmem:[#allocation2 + $0x2c] ss:$16 sps:$4 sm:$0xff]   ;;  %v109_v13 = vshll.u32 %v1706_v9, 16 }
  0x25   :  { %370 = vmatpush1.bf16.msra.mxu0 %v1442_v18  ;;  %423 = vmatpush1.bf16.msra.mxu1 %v1443_v19  ;;  %v93_v51 = vrot.slane %v92_v47, 4  ;;  %v1474_v0 = vld [vmem:[#allocation2 + $0x20] ss:$16 sps:$4 sm:$0xff]   ;;  %v1477_v1 = vld [vmem:[#allocation2 + $0x28] ss:$16 sps:$4 sm:$0xff]   ;;  %v113_v14 = vshrl.u32 %v1706_v9, 16 }
  0x26   :  { %371 = vmatprep.subr.bf16.mxu0 %v1444_v20  ;;  %424 = vmatprep.subr.bf16.mxu1 %v1446_v21  ;;  %v88_v54 = vsel %vm1688_vm2, %v83_v50, %v87_v40  ;;  %v1482_v2 = vld [vmem:[#allocation2 + $0x44] ss:$16 sps:$4 sm:$0xff]   ;;  %v1485_v3 = vld [vmem:[#allocation2 + $0x4c] ss:$16 sps:$4 sm:$0xff]   ;;  %v1480_v4 = vld [vmem:[#allocation2 + $0x40] ss:$16 sps:$4 sm:$0xff]  }
  0x27   :  { %v98_v55 = vsel %vm1688_vm2, %v93_v51, %v97_v48  ;;  %v1483_v5 = vld [vmem:[#allocation2 + $0x48] ss:$16 sps:$4 sm:$0xff]   ;;  %v1488_v6 = vld [vmem:[#allocation2 + $0x64] ss:$16 sps:$4 sm:$0xff]   ;;  %v1491_v7 = vld [vmem:[#allocation2 + $0x6c] ss:$16 sps:$4 sm:$0xff]  }
  0x28   :  { %v1243_v57 = vcombine.high %v88_v54, %v98_v55  ;;  %v1242_v59 = vcombine.low %v88_v54, %v98_v55  ;;  %v1701_v8 = vld [vmem:[%s1781_s0 + $0x18] sm:$0xff]  ;;  %v1711_v10 = vld [vmem:[%s1781_s0 + $0x28] sm:$0x11]  ;;  %v1486_v16 = vld [vmem:[#allocation2 + $0x60] ss:$16 sps:$4 sm:$0xff]   ;;  %v111_v20 = vrot.slane %v109_v13, 5 }
  0x29   :  { %372 = vmatpush1.bf16.msra.mxu0 %v1448_v22  ;;  %425 = vmatpush1.bf16.msra.mxu1 %v1449_v23  ;;  %v100_v11 = vshrl.u32 %v1701_v8, 16  ;;  %v103_v12 = vshll.u32 %v1701_v8, 16  ;;  %v119_v15 = vshll.u32 %v1711_v10, 16  ;;  %v1489_v19 = vld [vmem:[#allocation2 + $0x68] ss:$16 sps:$4 sm:$0xff]   ;;  %v115_v21 = vrot.slane %v113_v14, 4 }
  0x2a   :  { %373 = vmatprep.subr.bf16.mxu0 %v1450_v24  ;;  %426 = vmatprep.subr.bf16.mxu1 %v1452_v25  ;;  %v1494_v22 = vld [vmem:[#allocation2 + $0x84] ss:$16 sps:$4 sm:$0xff]   ;;  %v1497_v23 = vld [vmem:[#allocation2 + $0x8c] ss:$16 sps:$4 sm:$0xff]   ;;  %v1498_v38 = vld [vmem:[#allocation2 + $0xa0] ss:$16 sps:$4 sm:$0xff]  }
  0x2b   :  { %1282 = vmatprep.mubr.msk.bf16.mxu0 %vm354_vm3, %v1243_v57  ;;  %1284 = vmatprep.mubr.msk.bf16.mxu1 %vm354_vm3, %v1243_v57  ;;  %v102_v17 = vrot.slane %v100_v11, 4  ;;  %v105_v18 = vrot.slane %v103_v12, 5  ;;  %v116_v25 = vor.u32 %v115_v21, %v111_v20  ;;  %v1500_v33 = vld [vmem:[#allocation2 + $0xa4] ss:$16 sps:$4 sm:$0xff]   ;;  %v1503_v35 = vld [vmem:[#allocation2 + $0xac] ss:$16 sps:$4 sm:$0xff]  }
  0x2c   :  { %v1501_v41 = vld [vmem:[#allocation2 + $0xa8] ss:$16 sps:$4 sm:$0xff]   ;;  %v1512_v47 = vld [vmem:[#allocation2 + $0xe4] ss:$16 sps:$4 sm:$0xff]   ;;  %v1515_v48 = vld [vmem:[#allocation2 + $0xec] ss:$16 sps:$4 sm:$0xff]  }
  0x2d   :  { %374 = vmatpush1.bf16.msra.mxu0 %v1454_v26  ;;  %427 = vmatpush1.bf16.msra.mxu1 %v1455_v27  ;;  %v106_v24 = vor.u32 %v105_v18, %v102_v17  ;;  %v121_v26 = vrot.slane %v119_v15, 5  ;;  %v1492_v27 = vld [vmem:[#allocation2 + $0x80] ss:$16 sps:$4 sm:$0xff]   ;;  %v117_v34 = vrot.slane %v116_v25, 4  ;;  %v1507_v46 = vld [vmem:[#allocation2 + $0xc8] ss:$16 sps:$4 sm:$0xff]  }
  0x2e   :  { %375 = vmatprep.subr.bf16.mxu0 %v1456_v28  ;;  %428 = vmatprep.subr.bf16.mxu1 %v1458_v29  ;;  %v1495_v29 = vld [vmem:[#allocation2 + $0x88] ss:$16 sps:$4 sm:$0xff]   ;;  %v1510_v49 = vld [vmem:[#allocation2 + $0xe0] ss:$16 sps:$4 sm:$0xff]   ;;  %v1518_v51 = vld [vmem:[#allocation2 + $0x104] ss:$16 sps:$4 sm:$0xff]  }
  0x2f   :  { %v107_v28 = vrot.slane %v106_v24, 4  ;;  %v122_v37 = vsel %vm1688_vm2, %v117_v34, %v121_v26  ;;  %v1513_v50 = vld [vmem:[#allocation2 + $0xe8] ss:$16 sps:$4 sm:$0xff]   ;;  %v1525_v55 = vld [vmem:[#allocation2 + $0x244] ss:$16 sps:$4 sm:$0xff]   ;;  %vm779_vm4 = vcmask 1042432  }
  0x30   :  { %v1519_v54 = vld [vmem:[#allocation2 + $0x108] ss:$16 sps:$4 sm:$0xff]   ;;  %v1523_v57 = vld [vmem:[#allocation2 + $0x240] ss:$16 sps:$4 sm:$0xff]   ;;  %vm780_vm5 = vcmask 1046532  }
  0x31   :  { %376 = vmatpush1.bf16.msra.mxu0 %v1460_v42  ;;  %429 = vmatpush1.bf16.msra.mxu1 %v1461_v43  ;;  %v112_v36 = vsel %vm1688_vm2, %v107_v28, %v111_v20  ;;  %v1506_v42 = vld [vmem:[#allocation2 + $0xc4] ss:$16 sps:$4 sm:$0xff]   ;;  %v1509_v43 = vld [vmem:[#allocation2 + $0xcc] ss:$16 sps:$4 sm:$0xff]   ;;  %vm1735_vm6 = vmor %vm779_vm4, %vm780_vm5 }
  0x32   :  { %377 = vmatprep.subr.bf16.mxu0 %v1462_v44  ;;  %430 = vmatprep.subr.bf16.mxu1 %v1464_v45  ;;  %v1245_v39 = vcombine.high %v112_v36, %v122_v37  ;;  %v1244_v40 = vcombine.low %v112_v36, %v122_v37  ;;  %v1287_v44 = vcombine.high %v1669_v30, %v1674_v31  ;;  %v1504_v45 = vld [vmem:[#allocation2 + $0xc0] ss:$16 sps:$4 sm:$0xff]   ;;  %v1539_v12 = vld [vmem:[#allocation2 + $0x288] ss:$16 sps:$4 sm:$0xff]   ;;  %v1544_v13 = vld [vmem:[#allocation2 + $0x2a4] ss:$16 sps:$4 sm:$0xff]  }
  0x33   :  { %v1536_v11 = vld [vmem:[#allocation2 + $0x280] ss:$16 sps:$4 sm:$0xff]   ;;  %v1547_v14 = vld [vmem:[#allocation2 + $0x2ac] ss:$16 sps:$4 sm:$0xff]   ;;  %v1545_v17 = vld [vmem:[#allocation2 + $0x2a8] ss:$16 sps:$4 sm:$0xff]  }
  0x34   :  { %v1550_v18 = vld [vmem:[#allocation2 + $0x2c4] ss:$16 sps:$4 sm:$0xff]   ;;  %v1548_v20 = vld [vmem:[#allocation2 + $0x2c0] ss:$16 sps:$4 sm:$0xff]   ;;  %v1551_v21 = vld [vmem:[#allocation2 + $0x2c8] ss:$16 sps:$4 sm:$0xff]  }
  0x35   :  { %378 = vmatpush1.bf16.msra.mxu0 %v1466_v52  ;;  %431 = vmatpush1.bf16.msra.mxu1 %v1467_v53  ;;  %v1521_v52 = vld [vmem:[#allocation2 + $0x10c] ss:$16 sps:$4 sm:$0xff]   ;;  %v1516_v53 = vld [vmem:[#allocation2 + $0x100] ss:$16 sps:$4 sm:$0xff]   ;;  %v1557_v25 = vld [vmem:[#allocation2 + $0x2e8] ss:$16 sps:$4 sm:$0xff]  }
  0x36   :  { %671 = vmatprep.subr.bf16.mxu0 %v1470_v56  ;;  %724 = vmatprep.subr.bf16.mxu1 %v1473_v58  ;;  %v1528_v56 = vld [vmem:[#allocation2 + $0x24c] ss:$16 sps:$4 sm:$0xff]   ;;  %v1286_v58 = vcombine.low %v1669_v30, %v1674_v31  ;;  %v1554_v24 = vld [vmem:[#allocation2 + $0x2e0] ss:$16 sps:$4 sm:$0xff]   ;;  %v1562_v26 = vld [vmem:[#allocation2 + $0x304] ss:$16 sps:$4 sm:$0xff]  }
  0x37   :  { %v1560_v28 = vld [vmem:[#allocation2 + $0x300] ss:$16 sps:$4 sm:$0xff]   ;;  %v1573_v34 = vld [vmem:[#allocation2 + $0x32c] ss:$16 sps:$4 sm:$0xff]   ;;  %v1571_v37 = vld [vmem:[#allocation2 + $0x328] ss:$16 sps:$4 sm:$0xff]  }
  0x38   :  { %394 = vmatmul.mubr.bf16.vlgmr.msra.gmra.mrb[0].mxu0 %v1242_v59  ;;  %447 = vmatmul.mubr.bf16.vlgmr.msra.gmra.mrb[0].mxu1 %v1242_v59  ;;  %v784_v59 = vrot.slane %v1674_v31, 5  ;;  %v1530_v31 = vld [vmem:[#allocation2 + $0x260] ss:$16 sps:$4 sm:$0xff]  }
  0x39   :  { %672 = vmatpush1.bf16.msra.mxu0 %v1468_v60  ;;  %725 = vmatpush1.bf16.msra.mxu1 %v1471_v61  ;;  %v1526_v60 = vld [vmem:[#allocation2 + $0x248] ss:$16 sps:$4 sm:$0xff]   ;;  %v1532_v61 = vld [vmem:[#allocation2 + $0x264] ss:$16 sps:$4 sm:$0xff]   ;;  %v1568_v36 = vld [vmem:[#allocation2 + $0x320] ss:$16 sps:$4 sm:$0xff]  }
  0x3a   :  { %673 = vmatprep.subr.bf16.mxu0 %v1476_v62  ;;  %726 = vmatprep.subr.bf16.mxu1 %v1479_v63  ;;  %v1535_v62 = vld [vmem:[#allocation2 + $0x26c] ss:$16 sps:$4 sm:$0xff]   ;;  %v1289_v63 = vcombine.high %v1701_v8, %v1706_v9 }
  0x3b   :  { %1283 = vmatprep.mubr.msk.bf16.mxu0 %vm354_vm3, %v1245_v39  ;;  %1285 = vmatprep.mubr.msk.bf16.mxu1 %vm354_vm3, %v1245_v39  ;;  %v1576_v39 = vld [vmem:[#allocation2 + $0x344] ss:$16 sps:$4 sm:$0xff]  }
  0x3d   :  { %674 = vmatpush1.bf16.msra.mxu0 %v1474_v0  ;;  %727 = vmatpush1.bf16.msra.mxu1 %v1477_v1  ;;  %v787_v0 = vrot.slane %v1679_v32, 5  ;;  %v1330_v1 = vrot.slane %v1669_v30, 9  ;;  %v1288_v30 = vcombine.low %v1701_v8, %v1706_v9 }
  0x3e   :  { %675 = vmatprep.subr.bf16.mxu0 %v1482_v2  ;;  %728 = vmatprep.subr.bf16.mxu1 %v1485_v3  ;;  %v786_v2 = vrot.slane %v784_v59, 4  ;;  %v1533_v3 = vld [vmem:[#allocation2 + $0x268] ss:$16 sps:$4 sm:$0xff]  }
  0x3f   :  { %v1745_v32 = vsel %vm1735_vm6, %v1330_v1, %v784_v59 }
  0x40   :  { %404 = vmatmul.mubr.bf16.gmra.mrb[4].mxu0 %v1244_v40  ;;  %457 = vmatmul.mubr.bf16.gmra.mrb[4].mxu1 %v1244_v40  ;;  %v1579_v40 = vld [vmem:[#allocation2 + $0x34c] ss:$16 sps:$4 sm:$0xff]  }
  0x41   :  { %676 = vmatpush1.bf16.msra.mxu0 %v1480_v4  ;;  %729 = vmatpush1.bf16.msra.mxu1 %v1483_v5  ;;  %v1538_v5 = vld [vmem:[#allocation2 + $0x284] ss:$16 sps:$4 sm:$0xff]  }
  0x42   :  { %677 = vmatprep.subr.bf16.mxu0 %v1488_v6  ;;  %730 = vmatprep.subr.bf16.mxu1 %v1491_v7  ;;  %v1541_v6 = vld [vmem:[#allocation2 + $0x28c] ss:$16 sps:$4 sm:$0xff]   ;;  %v1749_v7 = vsel %vm1735_vm6, %v786_v2, %v787_v0 }
  0x43   :  { %1326 = vmatprep.mubr.msk.bf16.mxu0 %vm354_vm3, %v1287_v44  ;;  %1328 = vmatprep.mubr.msk.bf16.mxu1 %vm354_vm3, %v1287_v44  ;;  %v1333_v15 = vcombine.high %v1745_v32, %v1749_v7  ;;  %v1577_v44 = vld [vmem:[#allocation2 + $0x348] ss:$16 sps:$4 sm:$0xff]  }
  0x45   :  { %678 = vmatpush1.bf16.msra.mxu0 %v1486_v16  ;;  %731 = vmatpush1.bf16.msra.mxu1 %v1489_v19  ;;  %v1542_v16 = vld [vmem:[#allocation2 + $0x2a0] ss:$16 sps:$4 sm:$0xff]   ;;  %v1553_v19 = vld [vmem:[#allocation2 + $0x2cc] ss:$16 sps:$4 sm:$0xff]  }
  0x46   :  { %679 = vmatprep.subr.bf16.mxu0 %v1494_v22  ;;  %732 = vmatprep.subr.bf16.mxu1 %v1497_v23  ;;  %v1556_v22 = vld [vmem:[#allocation2 + $0x2e4] ss:$16 sps:$4 sm:$0xff]   ;;  %v1559_v23 = vld [vmem:[#allocation2 + $0x2ec] ss:$16 sps:$4 sm:$0xff]  }
  0x49   :  { %680 = vmatpush1.bf16.msra.mxu0 %v1492_v27  ;;  %733 = vmatpush1.bf16.msra.mxu1 %v1495_v29  ;;  %v1565_v27 = vld [vmem:[#allocation2 + $0x30c] ss:$16 sps:$4 sm:$0xff]   ;;  %v1563_v29 = vld [vmem:[#allocation2 + $0x308] ss:$16 sps:$4 sm:$0xff]  }
  0x4a   :  { %681 = vmatprep.subr.bf16.mxu0 %v1500_v33  ;;  %734 = vmatprep.subr.bf16.mxu1 %v1503_v35  ;;  %v1570_v33 = vld [vmem:[#allocation2 + $0x324] ss:$16 sps:$4 sm:$0xff]   ;;  %v791_v35 = vrot.slane %v1706_v9, 5 }
  0x4d   :  { %682 = vmatpush1.bf16.msra.mxu0 %v1498_v38  ;;  %735 = vmatpush1.bf16.msra.mxu1 %v1501_v41  ;;  %v1331_v38 = vrot.slane %v1701_v8, 9  ;;  %v793_v41 = vrot.slane %v791_v35, 4  ;;  %v1332_v8 = vcombine.low %v1745_v32, %v1749_v7 }
  0x4e   :  { %683 = vmatprep.subr.bf16.mxu0 %v1506_v42  ;;  %736 = vmatprep.subr.bf16.mxu1 %v1509_v43  ;;  %v794_v42 = vrot.slane %v1711_v10, 5  ;;  %v1574_v43 = vld [vmem:[#allocation2 + $0x340] ss:$16 sps:$4 sm:$0xff]  }
  0x4f   :  { %v792_v9 = vsel %vm1735_vm6, %v1331_v38, %v791_v35 }
  0x51   :  { %684 = vmatpush1.bf16.msra.mxu0 %v1504_v45  ;;  %737 = vmatpush1.bf16.msra.mxu1 %v1507_v46  ;;  %v795_v45 = vsel %vm1735_vm6, %v793_v41, %v794_v42 }
  0x52   :  { %685 = vmatprep.subr.bf16.mxu0 %v1512_v47  ;;  %738 = vmatprep.subr.bf16.mxu1 %v1515_v48  ;;  %v1335_v46 = vcombine.high %v792_v9, %v795_v45  ;;  %v1334_v10 = vcombine.low %v792_v9, %v795_v45  ;;  %v1157_v47 = vlaneseq }
  0x54   :  { %v1158_v48 = vshrl.u32 %v1157_v47, 7 }
  0x55   :  { %686 = vmatpush1.bf16.msra.mxu0 %v1510_v49  ;;  %739 = vmatpush1.bf16.msra.mxu1 %v1513_v50 }
  0x56   :  { %687 = vmatprep.subr.bf16.mxu0 %v1518_v51  ;;  %740 = vmatprep.subr.bf16.mxu1 %v1521_v52  ;;  %v1159_v49 = vsub.s32 0, %v1158_v48  ;;  %v1167_v50 = vsub.s32 2, %v1158_v48  ;;  %v1155_v51 = vld [vmem:[%s1783_s2] sm:$0xf]  ;;  %v1163_v52 = vsub.s32 1, %v1158_v48  ;;  %s1631_s2 = smov [#allocation5]  }
  0x57   :  { %s1230_s11 = sshll.u32 %s1631_s2, 4  ;;  %s1231_s11 = int_to_ptr.vmem [resolvable:$true] %s1230_s11 }
  0x58   :  { %s1602_s12 = scalar_lea.vmem %s1231_s11, 2048  ;;  %p1607_p9 = scmp.lt.s32.totalorder %s1231_s11, %s1231_s11 }
  0x59   :  { %688 = vmatpush1.bf16.msra.mxu0 %v1516_v53  ;;  %741 = vmatpush1.bf16.msra.mxu1 %v1519_v54  ;;  %v1171_v53 = vsub.s32 3, %v1158_v48  ;;  %v1160_v54 = vrot.slane %v1155_v51, %v1159_v49  ;;  %p1603_p8 = scmp.ne.s32.totalorder %s1231_s11, %s1602_s12  ;;  %p1608_p10 = scmp.lt.s32.totalorder %s1602_s12, %s1602_s12 }
  0x5a   :  { %1033 = vmatprep.subr.bf16.mxu0 %v1525_v55  ;;  %1086 = vmatprep.subr.bf16.mxu1 %v1528_v56  ;;  %v1168_v55 = vrot.slane %v1155_v51, %v1167_v50  ;;  %v1164_v56 = vrot.slane %v1155_v51, %v1163_v52 }
  0x5b   :  { %p1609_p11 = por %p1608_p10, %p1607_p9 }
  0x5c   :  { %704 = vmatmul.mubr.bf16.vlgmr.msra.gmra.mrb[0].mxu0 %v1286_v58  ;;  %757 = vmatmul.mubr.bf16.vlgmr.msra.gmra.mrb[0].mxu1 %v1286_v58 }
  0x5d   :  { %1034 = vmatpush1.bf16.msra.mxu0 %v1523_v57  ;;  %1087 = vmatpush1.bf16.msra.mxu1 %v1526_v60  ;;  %v1172_v57 = vrot.slane %v1155_v51, %v1171_v53  ;;  %p1610_p12 = pnand %p1609_p11, %p1603_p8 }
  0x5e   :  { %1035 = vmatprep.subr.bf16.mxu0 %v1532_v61  ;;  %1088 = vmatprep.subr.bf16.mxu1 %v1535_v62 }
  0x5f   :  { %1327 = vmatprep.mubr.msk.bf16.mxu0 %vm354_vm3, %v1289_v63  ;;  %1329 = vmatprep.mubr.msk.bf16.mxu1 %vm354_vm3, %v1289_v63 }
  0x61   :  { %1036 = vmatpush1.bf16.msra.mxu0 %v1530_v31  ;;  %1089 = vmatpush1.bf16.msra.mxu1 %v1533_v3 }
  0x62   :  { %1037 = vmatprep.subr.bf16.mxu0 %v1538_v5  ;;  %1090 = vmatprep.subr.bf16.mxu1 %v1541_v6 }
  0x64   :  { %714 = vmatmul.mubr.bf16.gmra.mrb[4].mxu0 %v1288_v30  ;;  %767 = vmatmul.mubr.bf16.gmra.mrb[4].mxu1 %v1288_v30 }
  0x65   :  { %1038 = vmatpush1.bf16.msra.mxu0 %v1536_v11  ;;  %1091 = vmatpush1.bf16.msra.mxu1 %v1539_v12 }
  0x66   :  { %1039 = vmatprep.subr.bf16.mxu0 %v1544_v13  ;;  %1092 = vmatprep.subr.bf16.mxu1 %v1547_v14 }
  0x67   :  { %1372 = vmatprep.mubr.msk.bf16.mxu0 %vm354_vm3, %v1333_v15  ;;  %1374 = vmatprep.mubr.msk.bf16.mxu1 %vm354_vm3, %v1333_v15 }
  0x69   :  { %1040 = vmatpush1.bf16.msra.mxu0 %v1542_v16  ;;  %1093 = vmatpush1.bf16.msra.mxu1 %v1545_v17 }
  0x6a   :  { %1041 = vmatprep.subr.bf16.mxu0 %v1550_v18  ;;  %1094 = vmatprep.subr.bf16.mxu1 %v1553_v19 }
  0x6d   :  { %1042 = vmatpush1.bf16.msra.mxu0 %v1548_v20  ;;  %1095 = vmatpush1.bf16.msra.mxu1 %v1551_v21 }
  0x6e   :  { %1043 = vmatprep.subr.bf16.mxu0 %v1556_v22  ;;  %1096 = vmatprep.subr.bf16.mxu1 %v1559_v23 }
  0x71   :  { %1044 = vmatpush1.bf16.msra.mxu0 %v1554_v24  ;;  %1097 = vmatpush1.bf16.msra.mxu1 %v1557_v25 }
  0x72   :  { %1045 = vmatprep.subr.bf16.mxu0 %v1562_v26  ;;  %1098 = vmatprep.subr.bf16.mxu1 %v1565_v27 }
  0x75   :  { %1046 = vmatpush1.bf16.msra.mxu0 %v1560_v28  ;;  %1099 = vmatpush1.bf16.msra.mxu1 %v1563_v29 }
  0x76   :  { %1047 = vmatprep.subr.bf16.mxu0 %v1570_v33  ;;  %1100 = vmatprep.subr.bf16.mxu1 %v1573_v34 }
  0x79   :  { %1048 = vmatpush1.bf16.msra.mxu0 %v1568_v36  ;;  %1101 = vmatpush1.bf16.msra.mxu1 %v1571_v37 }
  0x7a   :  { %1049 = vmatprep.subr.bf16.mxu0 %v1576_v39  ;;  %1102 = vmatprep.subr.bf16.mxu1 %v1579_v40 }
  0x7d   :  { %1050 = vmatpush1.bf16.msra.mxu0 %v1574_v43  ;;  %1103 = vmatpush1.bf16.msra.mxu1 %v1577_v44 }
  0x80   :  { %1066 = vmatmul.mubr.bf16.vlgmr.msra.gmra.mrb[0].mxu0 %v1332_v8  ;;  %1119 = vmatmul.mubr.bf16.vlgmr.msra.gmra.mrb[0].mxu1 %v1332_v8 }
  0x81   :  { %1373 = vmatprep.mubr.msk.bf16.mxu0 %vm354_vm3, %v1335_v46  ;;  %1375 = vmatprep.mubr.msk.bf16.mxu1 %vm354_vm3, %v1335_v46 }
  0x88   :  { %1076 = vmatmul.mubr.bf16.gmra.mrb[4].mxu0 %v1334_v10  ;;  %1129 = vmatmul.mubr.bf16.gmra.mrb[4].mxu1 %v1334_v10 }
 0x153   :  { %v1067_v58 = vpop.f32.mrb[0].mxu0  ;;  %v1120_v59 = vpop.f32.mrb[0].mxu1 }
 0x154   :  { %v1177_v60 = vadd.f32 %v1160_v54, %v1067_v58  ;;  %v1179_v61 = vadd.f32 %v1168_v55, %v1120_v59  ;;  %v1069_v62 = vpop.f32.mrb[1].mxu0  ;;  %v1122_v63 = vpop.f32.mrb[1].mxu1 }
 0x155   :  { %v1178_v0 = vadd.f32 %v1164_v56, %v1069_v62  ;;  %v1180_v1 = vadd.f32 %v1172_v57, %v1122_v63  ;;  %v1071_v2 = vpop.f32.mrb[2].mxu0  ;;  %v1124_v31 = vpop.f32.mrb[2].mxu1 }
 0x156   :  { %v1193_v3 = vmax.f32 %v1177_v60, 0.0  ;;  %v1195_v4 = vmax.f32 %v1179_v61, 0.0  ;;  %v1181_v5 = vadd.f32 %v1160_v54, %v1071_v2  ;;  %v1183_v6 = vadd.f32 %v1168_v55, %v1124_v31  ;;  %v1073_v30 = vpop.f32.mrb[3].mxu0  ;;  %v1126_v32 = vpop.f32.mrb[3].mxu1 }
 0x157   :  { %v1194_v7 = vmax.f32 %v1178_v0, 0.0  ;;  %v1196_v11 = vmax.f32 %v1180_v1, 0.0  ;;  %v1182_v12 = vadd.f32 %v1164_v56, %v1073_v30  ;;  %v1184_v13 = vadd.f32 %v1172_v57, %v1126_v32 }
 0x158   :  { %1209 = vst [vmem:[#allocation5] sm:$0xff] %v1193_v3  ;;  %1211 = vst [vmem:[#allocation5 + $0x10] sm:$0xff] %v1195_v4  ;;  %v1197_v14 = vmax.f32 %v1181_v5, 0.0  ;;  %v1199_v15 = vmax.f32 %v1183_v6, 0.0 }
 0x159   :  { %1210 = vst [vmem:[#allocation5 + $0x8] sm:$0xff] %v1194_v7  ;;  %1212 = vst [vmem:[#allocation5 + $0x18] sm:$0xff] %v1196_v11  ;;  %v1198_v16 = vmax.f32 %v1182_v12, 0.0  ;;  %v1200_v17 = vmax.f32 %v1184_v13, 0.0 }
 0x15a   :  { %1213 = vst [vmem:[#allocation5 + $0x20] sm:$0xff] %v1197_v14  ;;  %1215 = vst [vmem:[#allocation5 + $0x30] sm:$0xff] %v1199_v15 }
 0x15b   :  { %1214 = vst [vmem:[#allocation5 + $0x28] sm:$0xff] %v1198_v16  ;;  %1216 = vst [vmem:[#allocation5 + $0x38] sm:$0xff] %v1200_v17  ;;  %v1077_v18 = vpop.f32.mrb[4].mxu0  ;;  %v1130_v19 = vpop.f32.mrb[4].mxu1 }
 0x15c   :  { %v1185_v20 = vadd.f32 %v1160_v54, %v1077_v18  ;;  %v1187_v21 = vadd.f32 %v1168_v55, %v1130_v19  ;;  %v1079_v22 = vpop.f32.mrb[5].mxu0  ;;  %v1132_v23 = vpop.f32.mrb[5].mxu1 }
 0x15d   :  { %v1186_v24 = vadd.f32 %v1164_v56, %v1079_v22  ;;  %v1188_v25 = vadd.f32 %v1172_v57, %v1132_v23  ;;  %v1081_v26 = vpop.f32.mrb[6].mxu0  ;;  %v1134_v27 = vpop.f32.mrb[6].mxu1 }
 0x15e   :  { %v1201_v28 = vmax.f32 %v1185_v20, 0.0  ;;  %v1203_v29 = vmax.f32 %v1187_v21, 0.0  ;;  %v1189_v33 = vadd.f32 %v1160_v54, %v1081_v26  ;;  %v1191_v34 = vadd.f32 %v1168_v55, %v1134_v27  ;;  %v1083_v35 = vpop.f32.mrb[7].mxu0  ;;  %v1136_v36 = vpop.f32.mrb[7].mxu1 }
 0x15f   :  { %v1202_v37 = vmax.f32 %v1186_v24, 0.0  ;;  %v1204_v38 = vmax.f32 %v1188_v25, 0.0  ;;  %v1190_v39 = vadd.f32 %v1164_v56, %v1083_v35  ;;  %v1192_v40 = vadd.f32 %v1172_v57, %v1136_v36 }
 0x160   :  { %1217 = vst [vmem:[#allocation5 + $0x40] sm:$0xff] %v1201_v28  ;;  %1219 = vst [vmem:[#allocation5 + $0x50] sm:$0xff] %v1203_v29  ;;  %v1205_v41 = vmax.f32 %v1189_v33, 0.0  ;;  %v1207_v42 = vmax.f32 %v1191_v34, 0.0 }
 0x161   :  { %1218 = vst [vmem:[#allocation5 + $0x48] sm:$0xff] %v1202_v37  ;;  %1220 = vst [vmem:[#allocation5 + $0x58] sm:$0xff] %v1204_v38  ;;  %v1206_v43 = vmax.f32 %v1190_v39, 0.0  ;;  %v1208_v44 = vmax.f32 %v1192_v40, 0.0 }
 0x162   :  { %1221 = vst [vmem:[#allocation5 + $0x60] sm:$0xff] %v1205_v41  ;;  %1223 = vst [vmem:[#allocation5 + $0x70] sm:$0xff] %v1207_v42 }
 0x163   :  { %1222 = vst [vmem:[#allocation5 + $0x68] sm:$0xff] %v1206_v43  ;;  %1224 = vst [vmem:[#allocation5 + $0x78] sm:$0xff] %v1208_v44 }
 0x164   :  { %1613 = shalt.err (!%p1610_p12)
}
 0x165   :  { %s1614_s15 = scalar_lea.hbm %s1784_s3, 2048 }
 0x166   :  { %p1615_p13 = scmp.ne.s32.totalorder %s1784_s3, %s1614_s15  ;;  %p1618_p0 = scmp.lt.u32.totalorder %s1614_s15, %s1784_s3 }
 0x168   :  { %p1620_p1 = pnand %p1618_p0, %p1615_p13 }
 0x16a   :  { %1623 = shalt.err (!%p1620_p1)
}
 0x16b   :  { %s1632_s20 = smov 512   ;;  %s1633_s21 = smov 32  }
 0x16c   :  { %1236 = dma.vmem_to_hbm [thread:$0]  %s1231_s11, 2048, %s1784_s3, [#allocation4], %s1632_s20, %s1632_s20, %s1633_s21  }
 0x16d   :  { %1626 = dma.done.wait [#allocation4], 2048  }
 0x16e   :  { %1627 = vsyncadd [#allocation4], 4294965248 }
 0x16f   :  { %1240 = vsyncpa [#allocation3], 1 }
 0x170   :  { %1241 = vsyncpa [#allocation4], 1 }

</bundles_post_ra>
